<compile_context>
chip_gen: v6e
topology: v6e:2x2x1
jax: 0.10.0
libtpu: 0.0.40
codegen_flags: <defaults>
</compile_context>

<pallas_src>
import functools
import math

import jax
import jax.numpy as jnp
from jax.experimental import pallas as pl
from jax.experimental.pallas import tpu as pltpu


def _round_up(x, m):
    return ((x + m - 1) // m) * m


# ---------------------------------------------------------------------------
# Fused kernels: out = relu(relu(X @ W6 + b6) @ W7 + b7)
# ---------------------------------------------------------------------------
def _two_mlp_kernel_single_k(x_ref, w6_ref, b6_ref, w7_ref, b7_ref, o_ref):
    """Whole fc6 reduction fits in one tile: no accumulator, no branches."""
    h = jnp.dot(x_ref[...].astype(jnp.bfloat16), w6_ref[...],
                preferred_element_type=jnp.float32) + b6_ref[...]
    h = jnp.maximum(h, 0.0)
    y = jnp.dot(h.astype(jnp.bfloat16), w7_ref[...],
                preferred_element_type=jnp.float32) + b7_ref[...]
    o_ref[...] = jnp.maximum(y, 0.0).astype(o_ref.dtype)


def _two_mlp_kernel_multi_k(x_ref, w6_ref, b6_ref, w7_ref, b7_ref, o_ref,
                            acc_ref):
    """fc6 reduction is tiled along K; fc7 runs in the last-K epilogue."""
    k = pl.program_id(1)

    @pl.when(k == 0)
    def _():
        acc_ref[...] = jnp.zeros_like(acc_ref)

    acc_ref[...] += jnp.dot(x_ref[...].astype(jnp.bfloat16), w6_ref[...],
                            preferred_element_type=jnp.float32)

    @pl.when(k == pl.num_programs(1) - 1)
    def _():
        h = jnp.maximum(acc_ref[...] + b6_ref[...], 0.0)
        y = jnp.dot(h.astype(jnp.bfloat16), w7_ref[...],
                    preferred_element_type=jnp.float32) + b7_ref[...]
        o_ref[...] = jnp.maximum(y, 0.0).astype(o_ref.dtype)


# ---------------------------------------------------------------------------
# Setup: one-time weight transpose / pad / bf16 cast, then a jitted forward.
# ---------------------------------------------------------------------------
def make_two_mlp_head(params, *, tk_cap=2048, tm_cap=128):
    """params: {'fc6': {'w': [N1,K], 'b': [N1]}, 'fc7': {'w': [N2,N1], 'b': [N2]}}
    (PyTorch nn.Linear layout).  Returns a jitted forward(x) closure."""
    w6, b6 = params['fc6']['w'], params['fc6']['b']
    w7, b7 = params['fc7']['w'], params['fc7']['b']
    n1, k = w6.shape
    n2 = w7.shape[0]

    n1p = _round_up(n1, 128)
    n2p = _round_up(n2, 128)
    tk = min(tk_cap, _round_up(k, 128))
    kp = _round_up(k, tk)

    # One-time HBM copies (never inside the per-call jit).
    w6t = jnp.pad(w6.T.astype(jnp.bfloat16), ((0, kp - k), (0, n1p - n1)))
    w7t = jnp.pad(w7.T.astype(jnp.bfloat16), ((0, n1p - n1), (0, n2p - n2)))
    b6p = jnp.pad(b6.astype(jnp.float32), (0, n1p - n1)).reshape(1, n1p)
    b7p = jnp.pad(b7.astype(jnp.float32), (0, n2p - n2)).reshape(1, n2p)

    n_k = kp // tk
    single_k = (n_k == 1)

    def forward(x):
        m = x.shape[0]
        xf = x.reshape(m, -1)                       # flatten(start_dim=1)
        assert xf.shape[1] == k, (xf.shape, k)

        # M tiling: biggest tile <= tm_cap, but >=2 tiles when possible so a
        # v7x megacore can shard the "parallel" M axis across both TCs.
        tm = min(tm_cap, _round_up(m, 8))
        if m >= 16 and _round_up(m, tm) // tm < 2:
            tm = _round_up((m + 1) // 2, 8)
        mp = _round_up(m, tm)

        if mp != m or kp != k:                      # only pad when needed
            xf = jnp.pad(xf, ((0, mp - m), (0, kp - k)))

        # Live VMEM: double-buffered X / W6 / biases / W7 / out tiles (+ acc).
        live = (2 * tm * tk * 4          # X tile (f32 in, cast in-kernel)
                + 2 * tk * n1p * 2       # W6 tile (bf16)
                + 2 * n1p * 4            # b6
                + 2 * n1p * n2p * 2      # W7 (bf16, fully resident)
                + 2 * n2p * 4            # b7
                + 2 * tm * n2p * 4       # out tile
                + tm * n1p * 4           # fc6 intermediate / accumulator
                + (tm * n1p * 4 if not single_k else 0))
        vmem_limit = min(max(int(1.5 * live), 16 << 20), 48 << 20)

        if single_k:
            out = pl.pallas_call(
                _two_mlp_kernel_single_k,
                out_shape=jax.ShapeDtypeStruct((mp, n2p), jnp.float32),
                grid=(mp // tm,),
                in_specs=[
                    pl.BlockSpec((tm, kp), lambda i: (i, 0)),     # X
                    pl.BlockSpec((kp, n1p), lambda i: (0, 0)),    # W6
                    pl.BlockSpec((1, n1p), lambda i: (0, 0)),     # b6
                    pl.BlockSpec((n1p, n2p), lambda i: (0, 0)),   # W7
                    pl.BlockSpec((1, n2p), lambda i: (0, 0)),     # b7
                ],
                out_specs=pl.BlockSpec((tm, n2p), lambda i: (i, 0)),
                compiler_params=pltpu.CompilerParams(
                    dimension_semantics=("parallel",),
                    vmem_limit_bytes=vmem_limit),
            )(xf, w6t, b6p, w7t, b7p)
        else:
            out = pl.pallas_call(
                _two_mlp_kernel_multi_k,
                out_shape=jax.ShapeDtypeStruct((mp, n2p), jnp.float32),
                grid=(mp // tm, n_k),
                in_specs=[
                    pl.BlockSpec((tm, tk), lambda i, kk: (i, kk)),    # X
                    pl.BlockSpec((tk, n1p), lambda i, kk: (kk, 0)),   # W6
                    pl.BlockSpec((1, n1p), lambda i, kk: (0, 0)),     # b6
                    pl.BlockSpec((n1p, n2p), lambda i, kk: (0, 0)),   # W7
                    pl.BlockSpec((1, n2p), lambda i, kk: (0, 0)),     # b7
                ],
                out_specs=pl.BlockSpec((tm, n2p), lambda i, kk: (i, 0)),
                scratch_shapes=[pltpu.VMEM((tm, n1p), jnp.float32)],
                compiler_params=pltpu.CompilerParams(
                    dimension_semantics=("parallel", "arbitrary"),
                    vmem_limit_bytes=vmem_limit),
            )(xf, w6t, b6p, w7t, b7p)

        if mp != m or n2p != n2:                    # only slice when needed
            out = out[:m, :n2]
        return out

    return jax.jit(forward)


# ---------------------------------------------------------------------------
# Deterministic init (matches nn.Linear default: U(-1/sqrt(fan_in), +...))
# ---------------------------------------------------------------------------
def _linear_init(key, out_f, in_f):
    kw, kb = jax.random.split(key)
    bound = 1.0 / math.sqrt(in_f)
    w = jax.random.uniform(kw, (out_f, in_f), jnp.float32, -bound, bound)
    b = jax.random.uniform(kb, (out_f,), jnp.float32, -bound, bound)
    return {'w': w, 'b': b}


# ---------------------------------------------------------------------------
if __name__ == "__main__":
    key = jax.random.PRNGKey(0)
    kx, k6, k7 = jax.random.split(key, 3)

    # ROI-pooled features: [num_rois, C, H, W] -> in_channels = C*H*W
    num_rois, c, h, w = 32, 8, 8, 8
    in_channels = c * h * w                            # 512
    representation_size = 256

    x = jax.random.normal(kx, (num_rois, c, h, w), jnp.float32)
    params = {'fc6': _linear_init(k6, representation_size, in_channels),
              'fc7': _linear_init(k7, representation_size, representation_size)}

    fwd = make_two_mlp_head(params)
    out = jax.block_until_ready(fwd(x))

    # Pure-JAX f32 reference (kernel uses bf16 MXU feeds + f32 accumulate,
    # so tolerance is looser than the old all-f32 path).
    xf = x.reshape(num_rois, -1)
    ref = jnp.maximum(xf @ params['fc6']['w'].T + params['fc6']['b'], 0.0)
    ref = jnp.maximum(ref @ params['fc7']['w'].T + params['fc7']['b'], 0.0)

    assert out.shape == (num_rois, representation_size), out.shape
    assert bool(jnp.all(jnp.isfinite(out)))
    assert bool(jnp.all(out >= 0.0))
    assert bool(jnp.allclose(out, ref, rtol=2e-2, atol=2e-2)), \
        float(jnp.max(jnp.abs(out - ref)))
    print("KERNEL_OK")
</pallas_src>

<mosaic_0001>
module attributes {stable_mosaic.version = 11 : i64} {
  func.func @_two_mlp_kernel_single_k(%arg0: i32, %arg1: memref<16x512xf32, #tpu.memory_space<vmem>>, %arg2: memref<512x256xbf16, #tpu.memory_space<vmem>>, %arg3: memref<1x256xf32, #tpu.memory_space<vmem>>, %arg4: memref<256x256xbf16, #tpu.memory_space<vmem>>, %arg5: memref<1x256xf32, #tpu.memory_space<vmem>>, %arg6: memref<16x256xf32, #tpu.memory_space<vmem>>) attributes {dimension_semantics = [#tpu.dimension_semantics<parallel>], iteration_bounds = array<i64: 2>, scalar_prefetch = 0 : i64, scratch_operands = 0 : i64, tpu.core_type = #tpu.core_type<tc>, window_params = [{transform_indices = @transform_0, window_bounds = array<i64: 16, 512>}, {pipeline_mode = #tpu.pipeline_mode<synchronous>, transform_indices = @transform_1, window_bounds = array<i64: 512, 256>}, {pipeline_mode = #tpu.pipeline_mode<synchronous>, transform_indices = @transform_2, window_bounds = array<i64: 1, 256>}, {pipeline_mode = #tpu.pipeline_mode<synchronous>, transform_indices = @transform_3, window_bounds = array<i64: 256, 256>}, {pipeline_mode = #tpu.pipeline_mode<synchronous>, transform_indices = @transform_4, window_bounds = array<i64: 1, 256>}, {transform_indices = @transform_5, window_bounds = array<i64: 16, 256>}]} {
    %c0 = arith.constant 0 : index
    %c0_0 = arith.constant 0 : index
    %0 = vector.load %arg1[%c0, %c0_0] : memref<16x512xf32, #tpu.memory_space<vmem>>, vector<16x512xf32>
    %1 = arith.truncf %0 : vector<16x512xf32> to vector<16x512xbf16>
    %c0_1 = arith.constant 0 : index
    %c0_2 = arith.constant 0 : index
    %2 = vector.load %arg2[%c0_1, %c0_2] : memref<512x256xbf16, #tpu.memory_space<vmem>>, vector<512x256xbf16>
    %cst = arith.constant dense<0.000000e+00> : vector<16x256xf32>
    %3 = tpu.matmul %1, %2, %cst {dimension_numbers = #tpu.dot_dimension_numbers<[1], [0], [0], [1], [0, 0, 1, 1], [], []>} : vector<16x512xbf16>, vector<512x256xbf16>, vector<16x256xf32> -> vector<16x256xf32>
    %c0_3 = arith.constant 0 : index
    %c0_4 = arith.constant 0 : index
    %4 = vector.load %arg3[%c0_3, %c0_4] : memref<1x256xf32, #tpu.memory_space<vmem>>, vector<1x256xf32>
    %5 = vector.broadcast %4 : vector<1x256xf32> to vector<16x256xf32>
    %6 = arith.addf %3, %5 : vector<16x256xf32>
    %cst_5 = arith.constant 0.000000e+00 : f32
    %7 = vector.broadcast %cst_5 : f32 to vector<16x256xf32>
    %8 = arith.maximumf %6, %7 : vector<16x256xf32>
    %9 = arith.truncf %8 : vector<16x256xf32> to vector<16x256xbf16>
    %c0_6 = arith.constant 0 : index
    %c0_7 = arith.constant 0 : index
    %10 = vector.load %arg4[%c0_6, %c0_7] : memref<256x256xbf16, #tpu.memory_space<vmem>>, vector<256x256xbf16>
    %cst_8 = arith.constant dense<0.000000e+00> : vector<16x256xf32>
    %11 = tpu.matmul %9, %10, %cst_8 {dimension_numbers = #tpu.dot_dimension_numbers<[1], [0], [0], [1], [0, 0, 1, 1], [], []>} : vector<16x256xbf16>, vector<256x256xbf16>, vector<16x256xf32> -> vector<16x256xf32>
    %c0_9 = arith.constant 0 : index
    %c0_10 = arith.constant 0 : index
    %12 = vector.load %arg5[%c0_9, %c0_10] : memref<1x256xf32, #tpu.memory_space<vmem>>, vector<1x256xf32>
    %13 = vector.broadcast %12 : vector<1x256xf32> to vector<16x256xf32>
    %14 = arith.addf %11, %13 : vector<16x256xf32>
    %cst_11 = arith.constant 0.000000e+00 : f32
    %15 = vector.broadcast %cst_11 : f32 to vector<16x256xf32>
    %16 = arith.maximumf %14, %15 : vector<16x256xf32>
    %c0_12 = arith.constant 0 : index
    %c0_13 = arith.constant 0 : index
    %17 = vector.load %arg6[%c0_12, %c0_13] : memref<16x256xf32, #tpu.memory_space<vmem>>, vector<16x256xf32>
    tpu.vector_store %arg6[%c0_12, %c0_13], %16 {strides = array<i32>} : memref<16x256xf32, #tpu.memory_space<vmem>>, vector<16x256xf32>,
    return
  }
  func.func @transform_0(%arg0: i32) -> (i32, i32) {
    %c0_i32 = arith.constant 0 : i32
    %c0_i32_0 = arith.constant 0 : i32
    return %arg0, %c0_i32 : i32, i32
  }
  func.func @transform_1(%arg0: i32) -> (i32, i32) {
    %c0_i32 = arith.constant 0 : i32
    %c0_i32_0 = arith.constant 0 : i32
    %c0_i32_1 = arith.constant 0 : i32
    return %c0_i32, %c0_i32_0 : i32, i32
  }
  func.func @transform_2(%arg0: i32) -> (i32, i32) {
    %c0_i32 = arith.constant 0 : i32
    %c0_i32_0 = arith.constant 0 : i32
    %c0_i32_1 = arith.constant 0 : i32
    return %c0_i32, %c0_i32_0 : i32, i32
  }
  func.func @transform_3(%arg0: i32) -> (i32, i32) {
    %c0_i32 = arith.constant 0 : i32
    %c0_i32_0 = arith.constant 0 : i32
    %c0_i32_1 = arith.constant 0 : i32
    return %c0_i32, %c0_i32_0 : i32, i32
  }
  func.func @transform_4(%arg0: i32) -> (i32, i32) {
    %c0_i32 = arith.constant 0 : i32
    %c0_i32_0 = arith.constant 0 : i32
    %c0_i32_1 = arith.constant 0 : i32
    return %c0_i32, %c0_i32_0 : i32, i32
  }
  func.func @transform_5(%arg0: i32) -> (i32, i32) {
    %c0_i32 = arith.constant 0 : i32
    %c0_i32_0 = arith.constant 0 : i32
    return %arg0, %c0_i32 : i32, i32
  }
}

</mosaic_0001>

<bundles_post_ra>
// kernel: forward.1
= control target key start
LH: loop header
LB: loop body
LE: loop exit
PB: predicated region body
PF: predicated region fallthrough
CT: control target
= control target key end

     0   :  { %10 = vsyncpa [#allocation3], 0  ;;  %s1856_s0 = inlined_call_operand.vmem [shape: f32[32,512], index: 0, kind: input, shape index: {}]   ;;  %s1857_s1 = inlined_call_operand.vmem [shape: bf16[512,256], index: 1, kind: input, shape index: {}]   ;;  %s1858_s2 = inlined_call_operand.vmem [shape: f32[1,256], index: 2, kind: input, shape index: {}]   ;;  %s1859_s3 = inlined_call_operand.hbm [shape: bf16[256,256], index: 3, kind: input, shape index: {}]   ;;  %s1860_s4 = inlined_call_operand.vmem [shape: f32[1,256], index: 4, kind: input, shape index: {}]   ;;  %s1861_s5 = inlined_call_operand.hbm [shape: f32[32,256], index: 5, kind: output, shape index: {}]  }
   0x1   :  { %11 = vsyncpa [#allocation4], 0 }
   0x2   :  { %13 = vsyncpa [#allocation4 + $0x1], 0  ;;  %s1529_s18 = smov 0   ;;  %s1531_s19 = smov 0  }
   0x3   :  { %s1533_s20 = smov 0   ;;  %s1535_s21 = smov 0  }
   0x4 LB: > { %s1550_s22 = sadd.s32 4294967295, %s1491_s21   ;;  %s1088_s23 = sadd.s32 4294967294, %s1491_s21   ;;  %s1491_s21 = sphi %s1535_s21, %s1869_s21   ;;  %s1487_s20 = sphi %s1533_s20, %s1868_s20   ;;  %s1483_s19 = sphi %s1531_s19, %s1867_s19   ;;  %s1479_s18 = sphi %s1529_s18, %s1866_s18  }
   0x5   : > { %s1554_s24 = sadd.s32 1, %s1491_s21   ;;  %s136_s25 = sadd.s32 1, %s1487_s20 }
   0x6   : > { %s133_s26 = ssub.s32 %s1491_s21, %s1554_s24  ;;  %p146_p0 = scmp.ne.s32.totalorder %s1487_s20, %s1483_s19 }
   0x7   : > { %p134_p1 = scmp.eq.s32.totalorder %s133_s26, 0  ;;  %p147_p2 = scmp.eq.s32.totalorder %s1550_s22, 1 }
   0x8   : > { %p152_p3 = scmp.ne.s32.totalorder %s1483_s19, %s1479_s18  ;;  %p153_p4 = scmp.eq.s32.totalorder %s1088_s23, 1 }
   0x9   : > { %s1565_s27 = scalar_select %p134_p1, %s1487_s20, %s136_s25  }
   0xa   : > { %p1567_p5 = por %p147_p2, %p146_p0  ;;  %p1571_p6 = por %p153_p4, %p152_p3 }
   0xb   : > { %p1089_p7 = scmp.ge.s32.totalorder %s1491_s21, 1  ;;  %p160_p8 = scmp.lt.s32.totalorder %s1491_s21, 3 }
   0xc   : > { %s1863_s29 = scalar_select %p1571_p6, 1, 0 }
   0xd   : > { %p1217_p9 = scmp.eq.s32.totalorder %s1550_s22, 0  ;;  %p1578_p10 = pnand %p1089_p7, %p160_p8 }
   0xe   : > { %s1493_s6 = smov [#allocation2]  }
   0xf   : > { %s178_s7 = sshll.u32 %s1493_s6, 4  ;;  %p1209_p11 = pneg %p1578_p10  ;;  %s179_s7 = int_to_ptr.vmem [resolvable:$true] %s178_s7 }
  0x10   : > { %s1412_s8 = scalar_lea.vmem %s179_s7, 4096  ;;  %p1420_p3 = scmp.lt.s32.totalorder %s179_s7, %s179_s7 }
  0x11   : > { %p1210_p12 = pnand %p1217_p9, %p1209_p11  ;;  %p1413_p0 = scmp.ne.s32.totalorder %s179_s7, %s1412_s8 }
  0x12   : > { %p1421_p4 = scmp.lt.s32.totalorder %s1412_s8, %s1412_s8 }
  0x13   : > { %p1403_p13 = pneg %p1210_p12 }
  0x14   : > { %p1422_p6 = por %p1421_p4, %p1420_p3 }
  0x15   : > { %p1415_p1 = pnand %p1413_p0, %p1403_p13 }
  0x17   : > { %p1416_p2 = pneg %p1415_p1 }
  0x19   : > { %p1423_p7 = pnand %p1422_p6, %p1416_p2 }
  0x1b   : > { %1426 = shalt.err (!%p1423_p7)
}
  0x1c   : > { %s1494_s9 = smov 128   ;;  %s1495_s10 = smov 8  }
  0x1d   : > { %1212 = dma.hbm_to_vmem [thread:$0]  (!%p1210_p12), %s1859_s3, 4096, %s179_s7, [#allocation3], %s1494_s9, %s1494_s9, %s1495_s10  }
  0x1e   : > { %207 = sbr.rel (%p1578_p10) target bundleno = 526 (0x20e), region = 40 }
  0x23   : > { %1470 = dma.done.wait (%p1217_p9), [#allocation3], 4096  }
  0x24   : > { %1472 = vsyncadd (%p1217_p9), [#allocation3], 4294963200  ;;  %v1257_v0 = vld [vmem:[%s1857_s1 + $0x74] ss:$8 sps:$4 sm:$0xff]   ;;  %v1261_v2 = vld [vmem:[%s1857_s1 + $0x70] ss:$8 sps:$4 sm:$0xff]  }
  0x25   : > { %v1259_v1 = vld [vmem:[%s1857_s1 + $0x174] ss:$8 sps:$4 sm:$0xff]   ;;  %652 = vmatprep.subr.bf16.mxu0 %v1257_v0  ;;  %v1262_v3 = vld [vmem:[%s1857_s1 + $0x170] ss:$8 sps:$4 sm:$0xff]   ;;  %v1263_v4 = vld [vmem:[%s1857_s1 + $0x64] ss:$8 sps:$4 sm:$0xff]  }
  0x26   : > { %695 = vmatprep.subr.bf16.mxu1 %v1259_v1  ;;  %653 = vmatpush1.bf16.msra.mxu0 %v1261_v2  ;;  %v1265_v5 = vld [vmem:[%s1857_s1 + $0x164] ss:$8 sps:$4 sm:$0xff]   ;;  %v1267_v6 = vld [vmem:[%s1857_s1 + $0x60] ss:$8 sps:$4 sm:$0xff]   ;;  %v1269_v8 = vld [vmem:[%s1857_s1 + $0x54] ss:$8 sps:$4 sm:$0xff]  }
  0x27   : > { %696 = vmatpush1.bf16.msra.mxu1 %v1262_v3  ;;  %654 = vmatprep.subr.bf16.mxu0 %v1263_v4  ;;  %v1268_v7 = vld [vmem:[%s1857_s1 + $0x160] ss:$8 sps:$4 sm:$0xff]   ;;  %v1271_v9 = vld [vmem:[%s1857_s1 + $0x154] ss:$8 sps:$4 sm:$0xff]   ;;  %v1273_v10 = vld [vmem:[%s1857_s1 + $0x50] ss:$8 sps:$4 sm:$0xff]  }
  0x28   : > { %697 = vmatprep.subr.bf16.mxu1 %v1265_v5  ;;  %v1274_v11 = vld [vmem:[%s1857_s1 + $0x150] ss:$8 sps:$4 sm:$0xff]   ;;  %v1275_v12 = vld [vmem:[%s1857_s1 + $0x44] ss:$8 sps:$4 sm:$0xff]   ;;  %v1279_v14 = vld [vmem:[%s1857_s1 + $0x40] ss:$8 sps:$4 sm:$0xff]  }
  0x29   : > { %v1277_v13 = vld [vmem:[%s1857_s1 + $0x144] ss:$8 sps:$4 sm:$0xff]   ;;  %v1280_v15 = vld [vmem:[%s1857_s1 + $0x140] ss:$8 sps:$4 sm:$0xff]   ;;  %v1281_v16 = vld [vmem:[%s1857_s1 + $0x34] ss:$8 sps:$4 sm:$0xff]  }
  0x2a   : > { %655 = vmatpush1.bf16.msra.mxu0 %v1267_v6  ;;  %v1283_v17 = vld [vmem:[%s1857_s1 + $0x134] ss:$8 sps:$4 sm:$0xff]   ;;  %v1285_v18 = vld [vmem:[%s1857_s1 + $0x30] ss:$8 sps:$4 sm:$0xff]   ;;  %v1287_v20 = vld [vmem:[%s1857_s1 + $0x24] ss:$8 sps:$4 sm:$0xff]  }
  0x2b   : > { %698 = vmatpush1.bf16.msra.mxu1 %v1268_v7  ;;  %656 = vmatprep.subr.bf16.mxu0 %v1269_v8  ;;  %v1286_v19 = vld [vmem:[%s1857_s1 + $0x130] ss:$8 sps:$4 sm:$0xff]   ;;  %v1289_v21 = vld [vmem:[%s1857_s1 + $0x124] ss:$8 sps:$4 sm:$0xff]   ;;  %v1291_v22 = vld [vmem:[%s1857_s1 + $0x20] ss:$8 sps:$4 sm:$0xff]  }
  0x2c   : > { %699 = vmatprep.subr.bf16.mxu1 %v1271_v9  ;;  %v1292_v23 = vld [vmem:[%s1857_s1 + $0x120] ss:$8 sps:$4 sm:$0xff]   ;;  %v1293_v24 = vld [vmem:[%s1857_s1 + $0x14] ss:$8 sps:$4 sm:$0xff]   ;;  %v1297_v26 = vld [vmem:[%s1857_s1 + $0x10] ss:$8 sps:$4 sm:$0xff]  }
  0x2d   : > { %v1295_v25 = vld [vmem:[%s1857_s1 + $0x114] ss:$8 sps:$4 sm:$0xff]   ;;  %v1298_v27 = vld [vmem:[%s1857_s1 + $0x110] ss:$8 sps:$4 sm:$0xff]   ;;  %v1299_v28 = vld [vmem:[%s1857_s1 + $0x4] ss:$8 sps:$4 sm:$0xff]  }
  0x2e   : > { %657 = vmatpush1.bf16.msra.mxu0 %v1273_v10  ;;  %v1301_v29 = vld [vmem:[%s1857_s1 + $0x104] ss:$8 sps:$4 sm:$0xff]   ;;  %s1095_s9 = sshll.u32 %s1550_s22, 1  ;;  %v1303_v30 = vld [vmem:[%s1857_s1] ss:$8 sps:$4 sm:$0xff]   ;;  %s233_s8 = sand.u32 1, %s1483_s19  }
  0x2f   : > { %700 = vmatpush1.bf16.msra.mxu1 %v1274_v11  ;;  %658 = vmatprep.subr.bf16.mxu0 %v1275_v12  ;;  %v1304_v31 = vld [vmem:[%s1857_s1 + $0x100] ss:$8 sps:$4 sm:$0xff]   ;;  %v1305_v32 = vld [vmem:[%s1857_s1 + $0xf4] ss:$8 sps:$4 sm:$0xff]   ;;  %p237_p6 = scmp.lt.s32.totalorder %s1095_s9, 3  ;;  %s1094_s10 = sshll.u32 %s233_s8, 5 }
  0x30   : > { %701 = vmatprep.subr.bf16.mxu1 %v1277_v13  ;;  %v1307_v33 = vld [vmem:[%s1857_s1 + $0x1f4] ss:$8 sps:$4 sm:$0xff]   ;;  %v1309_v34 = vld [vmem:[%s1857_s1 + $0xf0] ss:$8 sps:$4 sm:$0xff]   ;;  %v1311_v36 = vld [vmem:[%s1857_s1 + $0xe4] ss:$8 sps:$4 sm:$0xff]  }
  0x31   : > { %v1310_v35 = vld [vmem:[%s1857_s1 + $0x1f0] ss:$8 sps:$4 sm:$0xff]   ;;  %s1871_s9 = smov (!%p237_p6, %s1095_s9), 3  ;;  %v1313_v37 = vld [vmem:[%s1857_s1 + $0x1e4] ss:$8 sps:$4 sm:$0xff]   ;;  %s1202_s13 = sshll.u32 %s1550_s22, 9 }
  0x32   : > { %659 = vmatpush1.bf16.msra.mxu0 %v1279_v14  ;;  %v1315_v38 = vld [vmem:[%s1857_s1 + $0xe0] ss:$8 sps:$4 sm:$0xff]   ;;  %v1317_v40 = vld [vmem:[%s1857_s1 + $0xd4] ss:$8 sps:$4 sm:$0xff]   ;;  %s1200_s17 = sshll.u32 %s1871_s9, 5  ;;  %s235_s9 = scalar_lea.vmem [#allocation5], %s1094_s10 }
  0x33   : > { %702 = vmatpush1.bf16.msra.mxu1 %v1280_v15  ;;  %660 = vmatprep.subr.bf16.mxu0 %v1281_v16  ;;  %v1316_v39 = vld [vmem:[%s1857_s1 + $0x1e0] ss:$8 sps:$4 sm:$0xff]   ;;  %v1319_v41 = vld [vmem:[%s1857_s1 + $0x1d4] ss:$8 sps:$4 sm:$0xff]   ;;  %v1321_v42 = vld [vmem:[%s1857_s1 + $0xd0] ss:$8 sps:$4 sm:$0xff]   ;;  %s1731_s11 = scalar_lea.vmem %s1856_s0, %s1200_s17  ;;  %s1814_s16 = scalar_lea.hbm %s1861_s5, %s1202_s13 }
  0x34   : > { %703 = vmatprep.subr.bf16.mxu1 %v1283_v17  ;;  %v1322_v43 = vld [vmem:[%s1857_s1 + $0x1d0] ss:$8 sps:$4 sm:$0xff]   ;;  %v1323_v44 = vld [vmem:[%s1857_s1 + $0xc4] ss:$8 sps:$4 sm:$0xff]   ;;  %v1327_v50 = vld [vmem:[%s1857_s1 + $0xc0] ss:$8 sps:$4 sm:$0xff]  }
  0x35   : > { %v1325_v45 = vld [vmem:[%s1857_s1 + $0x1c4] ss:$8 sps:$4 sm:$0xff]   ;;  %v247_v48 = vld [vmem:[%s1731_s11 + $0x18] sm:$0xff]  ;;  %v1328_v51 = vld [vmem:[%s1857_s1 + $0x1c0] ss:$8 sps:$4 sm:$0xff]   ;;  %s1014_s12 = sshll.u32 %s235_s9, 4  ;;  %s1809_s12 = int_to_ptr.vmem [resolvable:$true] %s1014_s12 }
  0x36   : > { %661 = vmatpush1.bf16.msra.mxu0 %v1285_v18  ;;  %v245_v46 = vld [vmem:[%s1731_s11 + $0x8] sm:$0xff]  ;;  %v251_v49 = vld [vmem:[%s1731_s11 + $0x38] sm:$0xff]  ;;  %v244_v6 = vld [vmem:[%s1731_s11] sm:$0xff]  ;;  %s1816_s17 = scalar_lea.sflag [#allocation4], %s233_s8  ;;  %s1427_s22 = scalar_lea.vmem %s1809_s12, 512 }
  0x37   : > { %704 = vmatpush1.bf16.msra.mxu1 %v1286_v19  ;;  %662 = vmatprep.subr.bf16.mxu0 %v1287_v20  ;;  %v249_v47 = vld [vmem:[%s1731_s11 + $0x28] sm:$0xff]  ;;  %v1329_v52 = vld [vmem:[%s1857_s1 + $0xb4] ss:$8 sps:$4 sm:$0xff]   ;;  %v255_v54 = vpack.c.bf16 %v251_v49, %v247_v48  ;;  %v1333_v56 = vld [vmem:[%s1857_s1 + $0xb0] ss:$8 sps:$4 sm:$0xff]   ;;  %p1428_p8 = scmp.ne.s32.totalorder %s1809_s12, %s1427_s22  ;;  %s1496_s23 = smov [#allocation5]  }
  0x38   : > { %705 = vmatprep.subr.bf16.mxu1 %v1289_v21  ;;  %v253_v53 = vpack.c.bf16 %v249_v47, %v245_v46  ;;  %v1331_v55 = vld [vmem:[%s1857_s1 + $0x1b4] ss:$8 sps:$4 sm:$0xff]   ;;  %v1334_v57 = vld [vmem:[%s1857_s1 + $0x1b0] ss:$8 sps:$4 sm:$0xff]   ;;  %v1335_v58 = vld [vmem:[%s1857_s1 + $0xa4] ss:$8 sps:$4 sm:$0xff]  }
  0x39   : > { %727 = vmatprep.mubr.bf16.mxu1 %v255_v54  ;;  %v1337_v59 = vld [vmem:[%s1857_s1 + $0x1a4] ss:$8 sps:$4 sm:$0xff]   ;;  %v1339_v60 = vld [vmem:[%s1857_s1 + $0xa0] ss:$8 sps:$4 sm:$0xff]   ;;  %v1341_v62 = vld [vmem:[%s1857_s1 + $0x94] ss:$8 sps:$4 sm:$0xff]   ;;  %p1429_p9 = pnand %p1428_p8, %p1567_p5 }
  0x3a   : > { %663 = vmatpush1.bf16.msra.mxu0 %v1291_v22  ;;  %684 = vmatprep.mubr.bf16.mxu0 %v253_v53  ;;  %v1340_v61 = vld [vmem:[%s1857_s1 + $0x1a0] ss:$8 sps:$4 sm:$0xff]   ;;  %v1343_v63 = vld [vmem:[%s1857_s1 + $0x194] ss:$8 sps:$4 sm:$0xff]   ;;  %v1345_v0 = vld [vmem:[%s1857_s1 + $0x90] ss:$8 sps:$4 sm:$0xff]  }
  0x3b   : > { %706 = vmatpush1.bf16.msra.mxu1 %v1292_v23  ;;  %664 = vmatprep.subr.bf16.mxu0 %v1293_v24  ;;  %v1346_v1 = vld [vmem:[%s1857_s1 + $0x190] ss:$8 sps:$4 sm:$0xff]   ;;  %v1347_v2 = vld [vmem:[%s1857_s1 + $0x84] ss:$8 sps:$4 sm:$0xff]   ;;  %v1351_v4 = vld [vmem:[%s1857_s1 + $0x80] ss:$8 sps:$4 sm:$0xff]   ;;  %p1430_p10 = pneg %p1429_p9 }
  0x3c   : > { %707 = vmatprep.subr.bf16.mxu1 %v1295_v25  ;;  %v1349_v3 = vld [vmem:[%s1857_s1 + $0x184] ss:$8 sps:$4 sm:$0xff]   ;;  %v1352_v5 = vld [vmem:[%s1857_s1 + $0x180] ss:$8 sps:$4 sm:$0xff]   ;;  %v246_v8 = vld [vmem:[%s1731_s11 + $0x10] sm:$0xff]  ;;  %s1431_s25 = sshll.u32 %s1496_s23, 4  ;;  %s1432_s25 = int_to_ptr.vmem [resolvable:$false] %s1431_s25 }
  0x3d   : > { %v248_v7 = vld [vmem:[%s1731_s11 + $0x20] sm:$0xff]  ;;  %v250_v9 = vld [vmem:[%s1731_s11 + $0x30] sm:$0xff]  ;;  %s1433_s26 = scalar_lea.vmem %s1432_s25, 1024  ;;  %p1434_p11 = scmp.lt.s32.totalorder %s1809_s12, %s1432_s25 }
  0x3e   : > { %665 = vmatpush1.bf16.msra.mxu0 %v1297_v26  ;;  %v1355_v10 = vld [vmem:[#allocation2 + $0x74] ss:$8 sps:$4 sm:$0xff]   ;;  %v252_v11 = vpack.c.bf16 %v248_v7, %v244_v6  ;;  %v254_v12 = vpack.c.bf16 %v250_v9, %v246_v8  ;;  %v1353_v13 = vld [vmem:[#allocation2 + $0x70] ss:$8 sps:$4 sm:$0xff]   ;;  %v1358_v14 = vld [vmem:[#allocation2 + $0x64] ss:$8 sps:$4 sm:$0xff]   ;;  %p1435_p12 = scmp.lt.s32.totalorder %s1433_s26, %s1427_s22 }
  0x3f   : > { %708 = vmatpush1.bf16.msra.mxu1 %v1298_v27  ;;  %666 = vmatprep.subr.bf16.mxu0 %v1299_v28  ;;  %v1356_v15 = vld [vmem:[#allocation2 + $0x60] ss:$8 sps:$4 sm:$0xff]   ;;  %v1361_v16 = vld [vmem:[#allocation2 + $0x54] ss:$8 sps:$4 sm:$0xff]   ;;  %v1359_v17 = vld [vmem:[#allocation2 + $0x50] ss:$8 sps:$4 sm:$0xff]  }
  0x40   : > { %709 = vmatprep.subr.bf16.mxu1 %v1301_v29  ;;  %v1364_v18 = vld [vmem:[#allocation2 + $0x44] ss:$8 sps:$4 sm:$0xff]   ;;  %v1362_v19 = vld [vmem:[#allocation2 + $0x40] ss:$8 sps:$4 sm:$0xff]   ;;  %v1367_v20 = vld [vmem:[#allocation2 + $0x34] ss:$8 sps:$4 sm:$0xff]   ;;  %p1436_p13 = por %p1435_p12, %p1434_p11 }
  0x41   : > { %v1365_v21 = vld [vmem:[#allocation2 + $0x30] ss:$8 sps:$4 sm:$0xff]   ;;  %v1370_v22 = vld [vmem:[#allocation2 + $0x24] ss:$8 sps:$4 sm:$0xff]   ;;  %v1368_v23 = vld [vmem:[#allocation2 + $0x20] ss:$8 sps:$4 sm:$0xff]  }
  0x42   : > { %667 = vmatpush1.bf16.msra.mxu0 %v1303_v30  ;;  %v1373_v24 = vld [vmem:[#allocation2 + $0x14] ss:$8 sps:$4 sm:$0xff]   ;;  %v1371_v25 = vld [vmem:[#allocation2 + $0x10] ss:$8 sps:$4 sm:$0xff]   ;;  %v1376_v26 = vld [vmem:[#allocation2 + $0x4] ss:$8 sps:$4 sm:$0xff]   ;;  %p1437_p0 = pnand %p1436_p13, %p1430_p10 }
  0x43   : > { %710 = vmatpush1.bf16.msra.mxu1 %v1304_v31  ;;  %668 = vmatprep.subr.bf16.mxu0 %v1305_v32  ;;  %v1374_v27 = vld [vmem:[#allocation2] ss:$8 sps:$4 sm:$0xff]   ;;  %v1379_v28 = vld [vmem:[#allocation2 + $0xf4] ss:$8 sps:$4 sm:$0xff]   ;;  %v1377_v29 = vld [vmem:[#allocation2 + $0xf0] ss:$8 sps:$4 sm:$0xff]  }
  0x44   : > { %711 = vmatprep.subr.bf16.mxu1 %v1307_v33  ;;  %v1382_v30 = vld [vmem:[#allocation2 + $0xe4] ss:$8 sps:$4 sm:$0xff]   ;;  %v1380_v31 = vld [vmem:[#allocation2 + $0xe0] ss:$8 sps:$4 sm:$0xff]   ;;  %v1385_v32 = vld [vmem:[#allocation2 + $0xd4] ss:$8 sps:$4 sm:$0xff]  }
  0x45   : > { %v1383_v33 = vld [vmem:[#allocation2 + $0xd0] ss:$8 sps:$4 sm:$0xff]   ;;  %v320_v48 = vld [vmem:[%s1858_s2] sm:$0x3] }
  0x46   : > { %669 = vmatpush2.bf16.msra.mxu0 %v1309_v34  ;;  %v1388_v34 = vld [vmem:[#allocation2 + $0xc4] ss:$8 sps:$4 sm:$0xff]   ;;  %v776_v9 = vld [vmem:[%s1860_s4] sm:$0x3] }
  0x47   : > { %712 = vmatpush2.bf16.msra.mxu1 %v1310_v35  ;;  %670 = vmatprep.subr.bf16.mxu0 %v1311_v36  ;;  %v1386_v35 = vld [vmem:[#allocation2 + $0xc0] ss:$8 sps:$4 sm:$0xff]   ;;  %v1391_v36 = vld [vmem:[#allocation2 + $0xb4] ss:$8 sps:$4 sm:$0xff]  }
  0x48   : > { %713 = vmatprep.subr.bf16.mxu1 %v1313_v37  ;;  %v1389_v37 = vld [vmem:[#allocation2 + $0xb0] ss:$8 sps:$4 sm:$0xff]  }
  0x4a   : > { %671 = vmatpush2.bf16.msra.mxu0 %v1315_v38  ;;  %v1394_v38 = vld [vmem:[#allocation2 + $0xa4] ss:$8 sps:$4 sm:$0xff]  }
  0x4b   : > { %714 = vmatpush2.bf16.msra.mxu1 %v1316_v39  ;;  %672 = vmatprep.subr.bf16.mxu0 %v1317_v40  ;;  %v1392_v39 = vld [vmem:[#allocation2 + $0xa0] ss:$8 sps:$4 sm:$0xff]   ;;  %v1397_v40 = vld [vmem:[#allocation2 + $0x94] ss:$8 sps:$4 sm:$0xff]  }
  0x4c   : > { %715 = vmatprep.subr.bf16.mxu1 %v1319_v41  ;;  %v1395_v41 = vld [vmem:[#allocation2 + $0x90] ss:$8 sps:$4 sm:$0xff]  }
  0x4e   : > { %673 = vmatpush2.bf16.msra.mxu0 %v1321_v42  ;;  %v1400_v42 = vld [vmem:[#allocation2 + $0x84] ss:$8 sps:$4 sm:$0xff]  }
  0x4f   : > { %716 = vmatpush2.bf16.msra.mxu1 %v1322_v43  ;;  %674 = vmatprep.subr.bf16.mxu0 %v1323_v44  ;;  %v1398_v43 = vld [vmem:[#allocation2 + $0x80] ss:$8 sps:$4 sm:$0xff]   ;;  %v322_v44 = vlaneseq }
  0x50   : > { %717 = vmatprep.subr.bf16.mxu1 %v1325_v45 }
  0x51   : > { %v323_v45 = vshrl.u32 %v322_v44, 7 }
  0x52   : > { %675 = vmatpush2.bf16.msra.mxu0 %v1327_v50 }
  0x53   : > { %718 = vmatpush2.bf16.msra.mxu1 %v1328_v51  ;;  %676 = vmatprep.subr.bf16.mxu0 %v1329_v52  ;;  %v328_v46 = vsub.s32 1, %v323_v45  ;;  %v324_v47 = vsub.s32 0, %v323_v45 }
  0x54   : > { %719 = vmatprep.subr.bf16.mxu1 %v1331_v55 }
  0x55   : > { %v329_v49 = vrot.slane %v320_v48, %v328_v46  ;;  %v325_v50 = vrot.slane %v320_v48, %v324_v47 }
  0x56   : > { %677 = vmatpush2.bf16.msra.mxu0 %v1333_v56 }
  0x57   : > { %720 = vmatpush2.bf16.msra.mxu1 %v1334_v57  ;;  %678 = vmatprep.subr.bf16.mxu0 %v1335_v58 }
  0x58   : > { %721 = vmatprep.subr.bf16.mxu1 %v1337_v59 }
  0x5a   : > { %679 = vmatpush2.bf16.msra.mxu0 %v1339_v60 }
  0x5b   : > { %722 = vmatpush2.bf16.msra.mxu1 %v1340_v61  ;;  %680 = vmatprep.subr.bf16.mxu0 %v1341_v62 }
  0x5c   : > { %723 = vmatprep.subr.bf16.mxu1 %v1343_v63 }
  0x5e   : > { %681 = vmatpush2.bf16.msra.mxu0 %v1345_v0 }
  0x5f   : > { %724 = vmatpush2.bf16.msra.mxu1 %v1346_v1  ;;  %682 = vmatprep.subr.bf16.mxu0 %v1347_v2 }
  0x60   : > { %725 = vmatprep.subr.bf16.mxu1 %v1349_v3 }
  0x62   : > { %683 = vmatpush2.bf16.msra.mxu0 %v1351_v4 }
  0x63   : > { %726 = vmatpush2.bf16.msra.mxu1 %v1352_v5  ;;  %948 = vmatprep.subr.bf16.mxu0 %v1355_v10  ;;  %v781_v10 = vrot.slane %v776_v9, %v324_v47 }
  0x65   : > { %685 = vmatmul.mubr.bf16.vlgmr.msra.gmra.mxu0 %v252_v11  ;;  %v785_v11 = vrot.slane %v776_v9, %v328_v46 }
  0x66   : > { %728 = vmatmul.mubr.bf16.vlgmr.msra.gmra.mxu1 %v254_v12  ;;  %949 = vmatpush1.bf16.msra.mxu0 %v1353_v13 }
  0x67   : > { %950 = vmatprep.subr.bf16.mxu0 %v1358_v14 }
  0x6a   : > { %951 = vmatpush1.bf16.msra.mxu0 %v1356_v15 }
  0x6b   : > { %952 = vmatprep.subr.bf16.mxu0 %v1361_v16 }
  0x6e   : > { %953 = vmatpush1.bf16.msra.mxu0 %v1359_v17 }
  0x6f   : > { %954 = vmatprep.subr.bf16.mxu0 %v1364_v18 }
  0x72   : > { %955 = vmatpush1.bf16.msra.mxu0 %v1362_v19 }
  0x73   : > { %956 = vmatprep.subr.bf16.mxu0 %v1367_v20 }
  0x76   : > { %957 = vmatpush1.bf16.msra.mxu0 %v1365_v21 }
  0x77   : > { %958 = vmatprep.subr.bf16.mxu0 %v1370_v22 }
  0x7a   : > { %959 = vmatpush1.bf16.msra.mxu0 %v1368_v23 }
  0x7b   : > { %960 = vmatprep.subr.bf16.mxu0 %v1373_v24 }
  0x7e   : > { %961 = vmatpush1.bf16.msra.mxu0 %v1371_v25 }
  0x7f   : > { %962 = vmatprep.subr.bf16.mxu0 %v1376_v26 }
  0x82   : > { %963 = vmatpush1.bf16.msra.mxu0 %v1374_v27 }
  0x83   : > { %964 = vmatprep.subr.bf16.mxu0 %v1379_v28 }
  0x86   : > { %965 = vmatpush2.bf16.msra.mxu0 %v1377_v29 }
  0x87   : > { %966 = vmatprep.subr.bf16.mxu0 %v1382_v30 }
  0x8a   : > { %967 = vmatpush2.bf16.msra.mxu0 %v1380_v31 }
  0x8b   : > { %968 = vmatprep.subr.bf16.mxu0 %v1385_v32 }
  0x8e   : > { %969 = vmatpush2.bf16.msra.mxu0 %v1383_v33 }
  0x8f   : > { %970 = vmatprep.subr.bf16.mxu0 %v1388_v34 }
  0x92   : > { %971 = vmatpush2.bf16.msra.mxu0 %v1386_v35 }
  0x93   : > { %972 = vmatprep.subr.bf16.mxu0 %v1391_v36 }
  0x96   : > { %973 = vmatpush2.bf16.msra.mxu0 %v1389_v37 }
  0x97   : > { %974 = vmatprep.subr.bf16.mxu0 %v1394_v38 }
  0x9a   : > { %975 = vmatpush2.bf16.msra.mxu0 %v1392_v39 }
  0x9b   : > { %976 = vmatprep.subr.bf16.mxu0 %v1397_v40 }
  0x9e   : > { %977 = vmatpush2.bf16.msra.mxu0 %v1395_v41 }
  0x9f   : > { %978 = vmatprep.subr.bf16.mxu0 %v1400_v42 }
  0xa2   : > { %979 = vmatpush2.bf16.msra.mxu0 %v1398_v43 }
 0x125   : > { %v686_v51 = vpop.f32.mrf.mxu0 }
 0x126   : > { %v729_v52 = vpop.f32.mrf.mxu1  ;;  %v687_v56 = vadd.f32 %v686_v51, %v325_v50 }
 0x127   : > { %v688_v53 = vpop.f32.mrf.mxu0 }
 0x128   : > { %v731_v54 = vpop.f32.mrf.mxu1  ;;  %v689_v55 = vadd.f32 %v688_v53, %v329_v49  ;;  %v730_v0 = vadd.f32 %v729_v52, %v687_v56 }
 0x129   : > { %v690_v57 = vpop.f32.mrf.mxu0 }
 0x12a   : > { %v733_v58 = vpop.f32.mrf.mxu1  ;;  %v691_v59 = vadd.f32 %v690_v57, %v325_v50  ;;  %v732_v61 = vadd.f32 %v731_v54, %v689_v55  ;;  %v738_v6 = vmax.f32 %v730_v0, 0.0 }
 0x12b   : > { %v692_v60 = vpop.f32.mrf.mxu0 }
 0x12c   : > { %v734_v62 = vadd.f32 %v733_v58, %v691_v59  ;;  %v693_v63 = vadd.f32 %v692_v60, %v329_v49  ;;  %v735_v1 = vpop.f32.mrf.mxu1  ;;  %v739_v4 = vmax.f32 %v732_v61, 0.0 }
 0x12e   : > { %v736_v2 = vadd.f32 %v735_v1, %v693_v63  ;;  %v740_v3 = vmax.f32 %v734_v62, 0.0 }
 0x130   : > { %v741_v5 = vmax.f32 %v736_v2, 0.0  ;;  %v742_v8 = vpack.c.bf16 %v740_v3, %v738_v6 }
 0x132   : > { %v743_v7 = vpack.c.bf16 %v741_v5, %v739_v4 }
 0x134   : > { %980 = vmatprep.mubr.bf16.mxu0 %v743_v7 }
 0x135   : > { %981 = vmatmul.mubr.bf16.vlgmr.msra.gmra.mxu0 %v742_v8 }
 0x1f5   : > { %v982_v12 = vpop.f32.mrf.mxu0 }
 0x1f6   : > { %v983_v13 = vadd.f32 %v982_v12, %v781_v10 }
 0x1f7   : > { %v984_v14 = vpop.f32.mrf.mxu0 }
 0x1f8   : > { %v991_v15 = vmax.f32 %v983_v13, 0.0  ;;  %v985_v16 = vadd.f32 %v984_v14, %v785_v11 }
 0x1f9   : > { %v986_v17 = vpop.f32.mrf.mxu0 }
 0x1fa   : > { %995 = vst [vmem:[%s235_s9] sm:$0xff] %v991_v15  ;;  %v992_v18 = vmax.f32 %v985_v16, 0.0  ;;  %v987_v19 = vadd.f32 %v986_v17, %v781_v10 }
 0x1fb   : > { %v988_v20 = vpop.f32.mrf.mxu0 }
 0x1fc   : > { %996 = vst [vmem:[%s235_s9 + $0x8] sm:$0xff] %v992_v18  ;;  %v993_v21 = vmax.f32 %v987_v19, 0.0  ;;  %v989_v22 = vadd.f32 %v988_v20, %v785_v11 }
 0x1fe   : > { %997 = vst [vmem:[%s235_s9 + $0x10] sm:$0xff] %v993_v21  ;;  %v994_v23 = vmax.f32 %v989_v22, 0.0 }
 0x200   : > { %998 = vst [vmem:[%s235_s9 + $0x18] sm:$0xff] %v994_v23 }
 0x201   : > { %1440 = shalt.err (!%p1437_p0)
}
 0x202   : > { %s1441_s11 = scalar_lea.hbm %s1814_s16, 512  ;;  %s1445_s7 = scalar_lea.hbm %s1861_s5, 1024 }
 0x203   : > { %p1442_p1 = scmp.ne.s32.totalorder %s1814_s16, %s1441_s11  ;;  %p1446_p4 = scmp.lt.s32.totalorder %s1814_s16, %s1861_s5 }
 0x204   : > { %p1447_p7 = scmp.lt.s32.totalorder %s1445_s7, %s1441_s11 }
 0x205   : > { %p1443_p2 = pnand %p1442_p1, %p1567_p5 }
 0x206   : > { %p1448_p6 = por %p1447_p7, %p1446_p4 }
 0x207   : > { %p1444_p3 = pneg %p1443_p2 }
 0x209   : > { %p1449_p8 = pnand %p1448_p6, %p1444_p3 }
 0x20b   : > { %1452 = shalt.err (!%p1449_p8)
}
 0x20c   : > { %s1497_s9 = smov 256   ;;  %s1498_s13 = smov 16  }
 0x20d   : > { %1207 = dma.vmem_to_hbm [thread:$0]  (%p1567_p5), %s1809_s12, 512, %s1814_s16, %s1816_s17, %s1497_s9, %s1497_s9, %s1498_s13  }
 0x20e PF: > { %p1219_p9 = scmp.ge.s32.totalorder %s1491_s21, 2  ;;  %s1029_s14 = sand.u32 1, %s1479_s18  }
 0x20f   : > { %p1865_p10 = scmp.ne.s32.totalorder %s1863_s29, 0  ;;  %s1030_s15 = scalar_lea.sflag [#allocation4], %s1029_s14 }
 0x211   : > { %p1214_p11 = pnand %p1219_p9, %p1865_p10 }
 0x213   : > { %p1215_p12 = pneg %p1214_p11 }
 0x215   : > { %1474 = dma.done.wait (%p1215_p12), %s1030_s15, 512  }
 0x216   : > { %1476 = vsyncadd (%p1215_p12), %s1030_s15, 4294966784  ;;  %p16_p13 = scmp.ge.s32.totalorder %s1554_s24, 4   ;;  %s1866_s18 = smov %s1483_s19 }
 0x217   : > { %s1867_s19 = smov %s1487_s20  ;;  %s1868_s20 = smov %s1565_s27 }
 0x218   : > { %s1869_s21 = smov %s1554_s24  ;;  %18 = sbr.rel (!%p16_p13) target bundleno = 4 (0x4), region = 80 }
 0x21d   :  { %1035 = vsyncpa [#allocation3], 1 }
 0x21e   :  { %1037 = vsyncpa [#allocation3 + $0x1], 1 }
 0x21f   :  { %1038 = vsyncpa [#allocation4], 1 }
 0x220   :  { %1040 = vsyncpa [#allocation4 + $0x1], 1 }

</bundles_post_ra>
